<compile_context>
chip_gen: v7x
topology: tpu7x:2x2x1
jax: 0.10.0
libtpu: 0.0.40
codegen_flags: <defaults>
</compile_context>

<pallas_src>
import functools

import jax
import jax.numpy as jnp
from jax.experimental import pallas as pl
from jax.experimental.pallas import tpu as pltpu


def _round_up(x, m):
    return ((x + m - 1) // m) * m


def _conv_mm_relu_kernel(p_ref, w_ref, b_ref, o_ref):
    # p_ref: (K, TM)        bf16 patches (M on lanes), pipelined per grid step
    # w_ref: (Cout_pad, K)  bf16 weights (resident across the grid)
    # b_ref: (Cout_pad, 1)  f32 bias     (resident across the grid)
    # o_ref: (Cout_pad, TM) f32 -> lane-dense, unmasked stores
    acc = jnp.dot(w_ref[...], p_ref[...], preferred_element_type=jnp.float32)
    acc = acc + b_ref[...]                      # f32 epilogue (lane broadcast)
    o_ref[...] = jnp.maximum(acc, 0.0).astype(o_ref.dtype)


@functools.partial(jax.jit, static_argnames=("tile_m",))
def demo_forward(x, weight, bias, *, tile_m=512):
    """x: (N, Cin, H, W) f32, weight: (Cout, Cin, 3, 3) f32, bias: (Cout,) f32."""
    N, Cin, H, W = x.shape
    Cout, _, KH, KW = weight.shape
    stride = KH                               # stride == kernel size == 3
    OH = (H - KH) // stride + 1
    OW = (W - KW) // stride + 1
    M = N * OH * OW
    K = Cin * KH * KW

    # --- im2col, transposed so M lands on the lane axis: (K, M) ---
    xc = x[:, :, : OH * stride, : OW * stride]
    patches_t = (
        xc.reshape(N, Cin, OH, KH, OW, KW)
        .transpose(1, 3, 5, 0, 2, 4)           # (Cin, KH, KW, N, OH, OW)
        .reshape(K, M)
    )

    # Tile M; pad M up to a multiple of the tile (tile itself a multiple of 128).
    TM = min(tile_m, _round_up(M, 128))
    M_pad = _round_up(M, TM)
    if M_pad != M:
        patches_t = jnp.pad(patches_t, ((0, 0), (0, M_pad - M)))
    patches_t = patches_t.astype(jnp.bfloat16)

    # Pad Cout 3 -> 8 (sublane-friendly); pad rows get zero weight / zero bias.
    COUT_PAD = 8
    w2d = (
        jnp.zeros((COUT_PAD, K), jnp.float32)
        .at[:Cout].set(weight.reshape(Cout, K))
        .astype(jnp.bfloat16)
    )
    b2d = jnp.zeros((COUT_PAD, 1), jnp.float32).at[:Cout, 0].set(bias)

    grid = (M_pad // TM,)
    out_t = pl.pallas_call(
        _conv_mm_relu_kernel,
        out_shape=jax.ShapeDtypeStruct((COUT_PAD, M_pad), jnp.float32),
        grid_spec=pltpu.PrefetchScalarGridSpec(
            num_scalar_prefetch=0,
            grid=grid,
            in_specs=[
                pl.BlockSpec((K, TM), lambda i: (0, i)),          # patch tile
                pl.BlockSpec((COUT_PAD, K), lambda i: (0, 0)),    # weights (resident)
                pl.BlockSpec((COUT_PAD, 1), lambda i: (0, 0)),    # bias (resident)
            ],
            out_specs=pl.BlockSpec((COUT_PAD, TM), lambda i: (0, i)),
        ),
        compiler_params=pltpu.CompilerParams(
            dimension_semantics=("parallel",),
        ),
    )(patches_t, w2d, b2d)

    # (Cout_pad, M_pad) -> (Cout, N, OH, OW) -> NCHW
    y = out_t[:Cout, :M].reshape(Cout, N, OH, OW).transpose(1, 0, 2, 3)
    return y


if __name__ == "__main__":
    key = jax.random.PRNGKey(0)
    kx, kw, kb = jax.random.split(key, 3)

    # Small shapes consistent with the module: N=2, Cin=3, H=W=24 -> OH=OW=8.
    x = jax.random.normal(kx, (2, 3, 24, 24), dtype=jnp.float32)

    # Deterministic Conv2d(3, 3, 3, stride=3) parameters (PyTorch-style uniform bound).
    fan_in = 3 * 3 * 3
    bound = 1.0 / (fan_in ** 0.5)
    weight = jax.random.uniform(kw, (3, 3, 3, 3), minval=-bound, maxval=bound,
                                dtype=jnp.float32)
    bias = jax.random.uniform(kb, (3,), minval=-bound, maxval=bound,
                              dtype=jnp.float32)

    y = demo_forward(x, weight, bias)
    y = jax.block_until_ready(y)
    assert y.shape == (2, 3, 8, 8)

    # Tight check against an identically-quantized reference (bf16 operands,
    # f32 accumulation) built with the same im2col -> matmul decomposition.
    N, Cin, H, W = x.shape
    Cout, _, KH, KW = weight.shape
    OH = OW = (H - KH) // KH + 1
    pt = (x[:, :, : OH * KH, : OW * KW]
          .reshape(N, Cin, OH, KH, OW, KW)
          .transpose(1, 3, 5, 0, 2, 4)
          .reshape(Cin * KH * KW, N * OH * OW)
          .astype(jnp.bfloat16))
    wt = weight.reshape(Cout, Cin * KH * KW).astype(jnp.bfloat16)
    ref_t = jnp.dot(wt, pt, preferred_element_type=jnp.float32) + bias[:, None]
    ref = jnp.maximum(ref_t, 0.0).reshape(Cout, N, OH, OW).transpose(1, 0, 2, 3)
    assert jnp.allclose(y, ref, atol=2e-3, rtol=2e-3), float(jnp.abs(y - ref).max())

    # Sanity vs the pure-f32 conv reference (loose tolerance for bf16 operands).
    ref_f32 = jax.lax.conv_general_dilated(
        x, weight, window_strides=(3, 3), padding="VALID",
        dimension_numbers=("NCHW", "OIHW", "NCHW"))
    ref_f32 = jnp.maximum(ref_f32 + bias.reshape(1, 3, 1, 1), 0.0)
    assert jnp.allclose(y, ref_f32, atol=5e-2, rtol=5e-2)

    print("KERNEL_OK")
</pallas_src>

<mosaic_0001>
module attributes {stable_mosaic.version = 11 : i64} {
  func.func @_conv_mm_relu_kernel(%arg0: i32, %arg1: memref<27x128xbf16, #tpu.memory_space<vmem>>, %arg2: memref<8x27xbf16, #tpu.memory_space<vmem>>, %arg3: memref<8x1xf32, #tpu.memory_space<vmem>>, %arg4: memref<8x128xf32, #tpu.memory_space<vmem>>) attributes {dimension_semantics = [#tpu.dimension_semantics<parallel>], iteration_bounds = array<i64: 1>, scalar_prefetch = 0 : i64, scratch_operands = 0 : i64, tpu.core_type = #tpu.core_type<tc>, window_params = [{transform_indices = @transform_0, window_bounds = array<i64: 27, 128>}, {pipeline_mode = #tpu.pipeline_mode<synchronous>, transform_indices = @transform_1, window_bounds = array<i64: 8, 27>}, {pipeline_mode = #tpu.pipeline_mode<synchronous>, transform_indices = @transform_2, window_bounds = array<i64: 8, 1>}, {transform_indices = @transform_3, window_bounds = array<i64: 8, 128>}]} {
    %c0 = arith.constant 0 : index
    %c0_0 = arith.constant 0 : index
    %0 = vector.load %arg2[%c0, %c0_0] : memref<8x27xbf16, #tpu.memory_space<vmem>>, vector<8x27xbf16>
    %c0_1 = arith.constant 0 : index
    %c0_2 = arith.constant 0 : index
    %1 = vector.load %arg1[%c0_1, %c0_2] : memref<27x128xbf16, #tpu.memory_space<vmem>>, vector<27x128xbf16>
    %cst = arith.constant dense<0.000000e+00> : vector<8x128xf32>
    %2 = tpu.matmul %0, %1, %cst {dimension_numbers = #tpu.dot_dimension_numbers<[1], [0], [0], [1], [0, 0, 1, 1], [], []>} : vector<8x27xbf16>, vector<27x128xbf16>, vector<8x128xf32> -> vector<8x128xf32>
    %c0_3 = arith.constant 0 : index
    %c0_4 = arith.constant 0 : index
    %3 = vector.load %arg3[%c0_3, %c0_4] : memref<8x1xf32, #tpu.memory_space<vmem>>, vector<8x1xf32>
    %4 = vector.broadcast %3 : vector<8x1xf32> to vector<8x128xf32>
    %5 = arith.addf %2, %4 : vector<8x128xf32>
    %cst_5 = arith.constant 0.000000e+00 : f32
    %6 = vector.broadcast %cst_5 : f32 to vector<8x128xf32>
    %7 = arith.maximumf %5, %6 : vector<8x128xf32>
    %c0_6 = arith.constant 0 : index
    %c0_7 = arith.constant 0 : index
    %8 = vector.load %arg4[%c0_6, %c0_7] : memref<8x128xf32, #tpu.memory_space<vmem>>, vector<8x128xf32>
    tpu.vector_store %arg4[%c0_6, %c0_7], %7 {strides = array<i32>} : memref<8x128xf32, #tpu.memory_space<vmem>>, vector<8x128xf32>,
    return
  }
  func.func @transform_0(%arg0: i32) -> (i32, i32) {
    %c0_i32 = arith.constant 0 : i32
    %c0_i32_0 = arith.constant 0 : i32
    return %c0_i32, %arg0 : i32, i32
  }
  func.func @transform_1(%arg0: i32) -> (i32, i32) {
    %c0_i32 = arith.constant 0 : i32
    %c0_i32_0 = arith.constant 0 : i32
    %c0_i32_1 = arith.constant 0 : i32
    return %c0_i32, %c0_i32_0 : i32, i32
  }
  func.func @transform_2(%arg0: i32) -> (i32, i32) {
    %c0_i32 = arith.constant 0 : i32
    %c0_i32_0 = arith.constant 0 : i32
    %c0_i32_1 = arith.constant 0 : i32
    return %c0_i32, %c0_i32_0 : i32, i32
  }
  func.func @transform_3(%arg0: i32) -> (i32, i32) {
    %c0_i32 = arith.constant 0 : i32
    %c0_i32_0 = arith.constant 0 : i32
    return %c0_i32, %arg0 : i32, i32
  }
}

</mosaic_0001>

<bundles_post_ra>
// kernel: demo_forward.1
= control target key start
LH: loop header
LB: loop body
LE: loop exit
PB: predicated region body
PF: predicated region fallthrough
CT: control target
= control target key end

     0   :  { %vm41_vm0 = vcmask 1044480   ;;  %vm42_vm1 = vcmask 1045504   ;;  %v115_v0 = vmov 0.0   ;;  %v116_v2 = vmov 65535   ;;  %s154_s0 = inlined_call_operand.vmem [shape: bf16[27,128], index: 0, kind: input, shape index: {}]   ;;  %s155_s2 = inlined_call_operand.vmem [shape: f32[8,1], index: 2, kind: input, shape index: {}]   ;;  %s156_s1 = inlined_call_operand.vmem [shape: bf16[8,27], index: 1, kind: input, shape index: {}]   ;;  %s157_s3 = inlined_call_operand.vmem [shape: f32[8,128], index: 3, kind: output, shape index: {}]  }
   0x1   :  { %100 = vmatprep.subr.bf16.mxu0 %v115_v0  ;;  %v113_v1 = vld [vmem:[%s154_s0] sm:$0xff]   ;;  %v43_v3 = vsel %vm41_vm0, 4294967295, %v116_v2  ;;  %v114_v4 = vld [vmem:[%s154_s0 + $0x8] sm:$0x3f]   ;;  %vm117_vm2 = vmmov 0   ;;  %v118_v8 = vmov 0  }
   0x2   :  { %101 = vmatpush3.bf16.msra.mxu0 %v113_v1  ;;  %v44_v5 = vsel %vm42_vm1, %v43_v3, 0  ;;  %104 = vmatprep.mubr.msk.bf16.mxu0 %vm117_vm2, %v115_v0  ;;  %v20_v7 = vld [vmem:[%s155_s2] sm:$0xff]  ;;  %vm37_vm3 = vcmask 220160  }
   0x3   :  { %102 = vmatprep.subr.bf16.mxu0 %v115_v0  ;;  %v46_v6 = vand.u32 %v114_v4, %v44_v5  ;;  %112 = vset.pattern.permute.xlu0 %v118_v8  ;;  %v15_v9 = vld [vmem:[%s156_s1] sm:$0xf] }
   0x4   :  { %23 = vperm.xlu0 %112, %v20_v7  }
   0x6   :  { %103 = vmatpush3.bf16.msra.mxu0 %v46_v6 }
   0x9   :  { %105 = vmatmul.mubr.msk.bf16.vlgmr.msra.gmra.mrb[0].mxu0 %vm37_vm3, %v15_v9 }
  0x83   :  { %v24_v10 = vpop.permute.xlu0 %23 }
  0xdc   :  { %v82_v11 = vpop.f32.mrb[0].mxu0 }
  0xdd   :  { %v83_v12 = vadd.f32 %v82_v11, %v24_v10  ;;  %v106_v13 = vpop.f32.mrb[1].mxu0 }
  0xde   :  { %v85_v14 = vpop.f32.mrb[2].mxu0 }
  0xdf   :  { %v88_v15 = vmax.f32 %v83_v12, 0.0  ;;  %v107_v16 = vpop.f32.mrb[3].mxu0 }
  0xe1   :  { %89 = vst [vmem:[%s157_s3] sm:$0xff] %v88_v15 }

</bundles_post_ra>
